<compile_context>
chip_gen: v7x
topology: tpu7x:2x2x1
jax: 0.10.0
libtpu: 0.0.40
codegen_flags: <defaults>
</compile_context>

<pallas_src>
import jax
import jax.numpy as jnp
from jax.experimental import pallas as pl
from jax.experimental.pallas import tpu as pltpu

_LANE = 128  # TPU lane width; channel dims are zero-padded up to this.


def _posegcn_kernel(adj_ref, p_ref, w_ref, bias_ref, x_ref, o_ref):
    """One grid step = one full PoseGCN forward over an (N, F) feature matrix.

    adj_ref : (2, N, N) f32   [0] = M1 = A_hat @ U^T,  [1] = A_hat
    p_ref   : (G, N)    f32   P = (pool @ U) @ A_hat
    w_ref   : (3, 128, 128) f32  zero-padded W1 / W2 / W3
    bias_ref: (2+G, 128) f32  rows 0/1 = b1/b2 (padded), rows 2: = b3_eff
    x_ref   : (1, N, F) f32
    o_ref   : (1, G, 128) f32 (columns >= out_dim are zero)
    """
    f32 = jnp.float32
    num_feat = x_ref.shape[-1]

    x = x_ref[0]                 # (N, F)
    m1 = adj_ref[0]              # (N, N)
    a_hat = adj_ref[1]           # (N, N)
    bias = bias_ref[...]         # (2+G, 128)

    # conv1 (+ folded GFT): ReLU((A_hat U^T) x W1 + b1)
    h = jnp.dot(m1, x, preferred_element_type=f32)                   # (N, F)
    w1 = w_ref[0][:num_feat, :]                                      # (F, 128)
    h = jnp.dot(h, w1, preferred_element_type=f32) + bias[0:1]
    h = jnp.maximum(h, 0.0)                                          # (N, 128)

    # conv2: ReLU((A_hat h) W2 + b2)
    h = jnp.dot(a_hat, h, preferred_element_type=f32)
    h = jnp.dot(h, w_ref[1], preferred_element_type=f32) + bias[1:2]
    h = jnp.maximum(h, 0.0)                                          # (N, 128)

    # conv3 + folded iGFT + mean-pool: P (h W3) + b3_eff
    h = jnp.dot(h, w_ref[2], preferred_element_type=f32)             # (N, 128)
    o_ref[0] = jnp.dot(p_ref[...], h, preferred_element_type=f32) + bias[2:]


def pack_operands(edge_index, batch, num_nodes, num_graphs, params):
    """One-time (per topology + parameter set) precompute and slab packing.

    Folds every topology-only matmul out of the per-forward hot path and packs
    the many tiny operands into a few lane-dense VMEM slabs.
    """
    f32 = jnp.float32
    n = num_nodes
    w1, b1, w2, b2, w3, b3 = params
    num_feat, h1 = w1.shape
    h2 = w2.shape[1]
    out_dim = w3.shape[1]

    # adjacency exactly as in the torch module: adj[src, tgt] = 1
    adj = jnp.zeros((n, n), f32).at[edge_index[0], edge_index[1]].set(1.0)

    # Laplacian and GFT basis.
    # TODO(synk): eigendecomposition has no Pallas TPU equivalent; it stays in
    # XLA inside this one-time topology precompute (outside the hot path).
    laplacian = jnp.diag(jnp.sum(adj, axis=1)) - adj
    _, u = jnp.linalg.eigh(laplacian)

    # PyG GCNConv normalized aggregation (add self loops, symmetric norm):
    #   out_i = sum_{edge j->i} d_j^{-1/2} d_i^{-1/2} (x_j W),  d = in-degree of A+I
    idx = jnp.arange(n)
    adj_sl = adj.at[idx, idx].set(1.0)
    deg = jnp.sum(adj_sl, axis=0)
    dinv = jnp.where(deg > 0, 1.0 / jnp.sqrt(deg), 0.0)
    a_hat = (dinv[:, None] * adj_sl.T) * dinv[None, :]

    # Fold the GFT into the first aggregate: M1 = A_hat @ U^T.
    m1 = jnp.dot(a_hat, u.T)
    adj_slab = jnp.stack([m1, a_hat]).astype(f32)            # (2, N, N)

    # Fold (iGFT + mean-pool) over the conv3 aggregate: P = pool @ U @ A_hat.
    gids = jnp.arange(num_graphs)[:, None]
    onehot = (batch[None, :] == gids).astype(f32)
    counts = jnp.maximum(onehot.sum(axis=1, keepdims=True), 1.0)
    pool = onehot / counts                                    # (G, N)
    pool_u = jnp.dot(pool, u)                                 # (G, N)
    p_mat = jnp.dot(pool_u, a_hat)                            # (G, N)

    # Weight slab: W1/W2/W3 zero-padded into common lane-dense (128,128) tiles.
    w_slab = jnp.zeros((3, _LANE, _LANE), f32)
    w_slab = w_slab.at[0, :num_feat, :h1].set(w1)
    w_slab = w_slab.at[1, :h1, :h2].set(w2)
    w_slab = w_slab.at[2, :h2, :out_dim].set(w3)

    # Bias slab.  pool@U is not row-stochastic, so the folded last layer needs
    # b3_eff = (pool@U @ 1_N)[:,None] * b3 rather than b3 itself.
    b3_eff = pool_u.sum(axis=1)[:, None] * b3[None, :]        # (G, out_dim)
    bias_slab = jnp.zeros((2 + num_graphs, _LANE), f32)
    bias_slab = bias_slab.at[0, :h1].set(b1)
    bias_slab = bias_slab.at[1, :h2].set(b2)
    bias_slab = bias_slab.at[2:, :out_dim].set(b3_eff)

    return adj_slab, p_mat, w_slab, bias_slab


def posegcn_forward(x, ops, out_dim):
    """Fused Pallas forward over a batch of feature matrices sharing topology.

    x: (B, N, F) or (N, F) float32.  Returns (B, G, out_dim) / (G, out_dim).
    """
    adj_slab, p_mat, w_slab, bias_slab = ops
    single = x.ndim == 2
    if single:
        x = x[None]
    x = x.astype(jnp.float32)
    bsz, n, f = x.shape
    g = p_mat.shape[0]

    out = pl.pallas_call(
        _posegcn_kernel,
        grid=(bsz,),
        out_shape=jax.ShapeDtypeStruct((bsz, g, _LANE), jnp.float32),
        in_specs=[
            # Topology / weight / bias slabs: constant block index -> DMA'd
            # once and kept resident in VMEM across all grid steps.
            pl.BlockSpec(adj_slab.shape, lambda b: (0, 0, 0)),
            pl.BlockSpec(p_mat.shape, lambda b: (0, 0)),
            pl.BlockSpec(w_slab.shape, lambda b: (0, 0, 0)),
            pl.BlockSpec(bias_slab.shape, lambda b: (0, 0)),
            # Per-step node features: double-buffered by the Pallas pipeline.
            pl.BlockSpec((1, n, f), lambda b: (b, 0, 0)),
        ],
        out_specs=pl.BlockSpec((1, g, _LANE), lambda b: (b, 0, 0)),
        # "parallel" batch axis: sharded across v7x's 2 TensorCores; neutral on
        # v5e/v6e.  Total VMEM use is well under 1 MiB, so the default scoped
        # limit is plenty (no vmem_limit override needed at these shapes).
        compiler_params=pltpu.CompilerParams(dimension_semantics=("parallel",)),
    )(adj_slab, p_mat, w_slab, bias_slab, x)

    # TODO(synk): for large N the whole-array design tops out around N~2.3-2.8k
    # on v7x (64 MiB VMEM) / ~3.5-4k on v5e-v6e; switch to a node-row-tiled
    # grid with the contraction axis last, an f32 VMEM accumulator, bf16
    # aggregate operands, and a per-generation vmem_limit_bytes budget.
    out = out[:, :, :out_dim]
    return out[0] if single else out


def _reference_forward(x, edge_index, batch, num_nodes, num_graphs, params):
    """Pure-JAX reference mirroring the PyTorch module (unfused, unfolded)."""
    w1, b1, w2, b2, w3, b3 = params
    f32 = jnp.float32
    n = num_nodes
    adj = jnp.zeros((n, n), f32).at[edge_index[0], edge_index[1]].set(1.0)
    laplacian = jnp.diag(jnp.sum(adj, axis=1)) - adj
    _, u = jnp.linalg.eigh(laplacian)
    idx = jnp.arange(n)
    adj_sl = adj.at[idx, idx].set(1.0)
    deg = jnp.sum(adj_sl, axis=0)
    dinv = jnp.where(deg > 0, 1.0 / jnp.sqrt(deg), 0.0)
    a_hat = (dinv[:, None] * adj_sl.T) * dinv[None, :]
    gids = jnp.arange(num_graphs)[:, None]
    onehot = (batch[None, :] == gids).astype(f32)
    pool = onehot / jnp.maximum(onehot.sum(axis=1, keepdims=True), 1.0)

    def one(xb):
        h = u.T @ xb
        h = jnp.maximum(a_hat @ h @ w1 + b1, 0.0)
        h = jnp.maximum(a_hat @ h @ w2 + b2, 0.0)
        h = a_hat @ h @ w3 + b3
        return pool @ (u @ h)

    return jnp.stack([one(x[i]) for i in range(x.shape[0])])


if __name__ == "__main__":
    key = jax.random.PRNGKey(0)

    num_nodes, num_features = 16, 4
    hidden_dim1, hidden_dim2, output_dim = 32, 32, 8
    num_graphs = 2
    batch_size = 4                        # independent forwards sharing topology
    nodes_per_graph = num_nodes // num_graphs

    k_x, k_w1, k_w2, k_w3, k_b1, k_b2, k_b3 = jax.random.split(key, 7)
    x = jax.random.normal(k_x, (batch_size, num_nodes, num_features), jnp.float32)

    # two ring graphs, undirected (both directions stored in edge_index)
    edges = []
    for g in range(num_graphs):
        base = g * nodes_per_graph
        for i in range(nodes_per_graph):
            a, b = base + i, base + (i + 1) % nodes_per_graph
            edges.append((a, b))
            edges.append((b, a))
    edge_index = jnp.array(edges, dtype=jnp.int32).T          # (2, E)
    batch = jnp.repeat(jnp.arange(num_graphs, dtype=jnp.int32), nodes_per_graph)

    def glorot(k, shape):
        lim = (6.0 / (shape[0] + shape[1])) ** 0.5
        return jax.random.uniform(k, shape, jnp.float32, -lim, lim)

    params = (
        glorot(k_w1, (num_features, hidden_dim1)),
        jax.random.uniform(k_b1, (hidden_dim1,), jnp.float32, -0.5, 0.5),
        glorot(k_w2, (hidden_dim1, hidden_dim2)),
        jax.random.uniform(k_b2, (hidden_dim2,), jnp.float32, -0.5, 0.5),
        glorot(k_w3, (hidden_dim2, output_dim)),
        jax.random.uniform(k_b3, (output_dim,), jnp.float32, -0.5, 0.5),
    )

    # One-time topology + parameter packing (eigh etc.) out of the hot path.
    ops = pack_operands(edge_index, batch, num_nodes, num_graphs, params)
    ops = jax.tree_util.tree_map(jax.block_until_ready, ops)

    out = posegcn_forward(x, ops, output_dim)
    out = jax.block_until_ready(out)

    assert out.shape == (batch_size, num_graphs, output_dim)
    assert bool(jnp.all(jnp.isfinite(out)))

    ref = _reference_forward(x, edge_index, batch, num_nodes, num_graphs, params)
    max_err = float(jnp.max(jnp.abs(out - ref)))
    assert max_err < 5e-2, f"kernel/reference mismatch: max abs err {max_err}"

    print("KERNEL_OK")
</pallas_src>

<mosaic_0001>
module attributes {stable_mosaic.version = 11 : i64} {
  func.func @_posegcn_kernel(%arg0: i32, %arg1: memref<2x16x16xf32, #tpu.memory_space<vmem>>, %arg2: memref<2x16xf32, #tpu.memory_space<vmem>>, %arg3: memref<3x128x128xf32, #tpu.memory_space<vmem>>, %arg4: memref<4x128xf32, #tpu.memory_space<vmem>>, %arg5: memref<1x16x4xf32, #tpu.memory_space<vmem>>, %arg6: memref<1x2x128xf32, #tpu.memory_space<vmem>>) attributes {dimension_semantics = [#tpu.dimension_semantics<parallel>], iteration_bounds = array<i64: 4>, scalar_prefetch = 0 : i64, scratch_operands = 0 : i64, tpu.core_type = #tpu.core_type<tc>, window_params = [{pipeline_mode = #tpu.pipeline_mode<synchronous>, transform_indices = @transform_0, window_bounds = array<i64: 2, 16, 16>}, {pipeline_mode = #tpu.pipeline_mode<synchronous>, transform_indices = @transform_1, window_bounds = array<i64: 2, 16>}, {pipeline_mode = #tpu.pipeline_mode<synchronous>, transform_indices = @transform_2, window_bounds = array<i64: 3, 128, 128>}, {pipeline_mode = #tpu.pipeline_mode<synchronous>, transform_indices = @transform_3, window_bounds = array<i64: 4, 128>}, {transform_indices = @transform_4, window_bounds = array<i64: 1, 16, 4>}, {transform_indices = @transform_5, window_bounds = array<i64: 1, 2, 128>}]} {
    %c0 = arith.constant 0 : index
    %c0_0 = arith.constant 0 : index
    %c0_1 = arith.constant 0 : index
    %0 = vector.load %arg5[%c0, %c0_0, %c0_1] : memref<1x16x4xf32, #tpu.memory_space<vmem>>, vector<1x16x4xf32>
    %1 = vector.shape_cast %0 : vector<1x16x4xf32> to vector<16x4xf32>
    %c0_2 = arith.constant 0 : index
    %c0_3 = arith.constant 0 : index
    %c0_4 = arith.constant 0 : index
    %2 = vector.load %arg1[%c0_2, %c0_3, %c0_4] : memref<2x16x16xf32, #tpu.memory_space<vmem>>, vector<1x16x16xf32>
    %3 = vector.shape_cast %2 : vector<1x16x16xf32> to vector<16x16xf32>
    %c1 = arith.constant 1 : index
    %c0_5 = arith.constant 0 : index
    %c0_6 = arith.constant 0 : index
    %4 = vector.load %arg1[%c1, %c0_5, %c0_6] : memref<2x16x16xf32, #tpu.memory_space<vmem>>, vector<1x16x16xf32>
    %5 = vector.shape_cast %4 : vector<1x16x16xf32> to vector<16x16xf32>
    %c0_7 = arith.constant 0 : index
    %c0_8 = arith.constant 0 : index
    %6 = vector.load %arg4[%c0_7, %c0_8] : memref<4x128xf32, #tpu.memory_space<vmem>>, vector<4x128xf32>
    %cst = arith.constant dense<0.000000e+00> : vector<16x4xf32>
    %7 = tpu.matmul %3, %1, %cst {dimension_numbers = #tpu.dot_dimension_numbers<[1], [0], [0], [1], [0, 0, 1, 1], [], []>} : vector<16x16xf32>, vector<16x4xf32>, vector<16x4xf32> -> vector<16x4xf32>
    %c0_9 = arith.constant 0 : index
    %c0_10 = arith.constant 0 : index
    %c0_11 = arith.constant 0 : index
    %8 = vector.load %arg3[%c0_9, %c0_10, %c0_11] : memref<3x128x128xf32, #tpu.memory_space<vmem>>, vector<1x128x128xf32>
    %9 = vector.shape_cast %8 : vector<1x128x128xf32> to vector<128x128xf32>
    %10 = vector.extract_strided_slice %9 {offsets = [0, 0], sizes = [4, 128], strides = [1, 1]} : vector<128x128xf32> to vector<4x128xf32>
    %cst_12 = arith.constant dense<0.000000e+00> : vector<16x128xf32>
    %11 = tpu.matmul %7, %10, %cst_12 {dimension_numbers = #tpu.dot_dimension_numbers<[1], [0], [0], [1], [0, 0, 1, 1], [], []>} : vector<16x4xf32>, vector<4x128xf32>, vector<16x128xf32> -> vector<16x128xf32>
    %12 = vector.extract_strided_slice %6 {offsets = [0, 0], sizes = [1, 128], strides = [1, 1]} : vector<4x128xf32> to vector<1x128xf32>
    %13 = vector.broadcast %12 : vector<1x128xf32> to vector<16x128xf32>
    %14 = arith.addf %11, %13 : vector<16x128xf32>
    %cst_13 = arith.constant 0.000000e+00 : f32
    %15 = vector.broadcast %cst_13 : f32 to vector<16x128xf32>
    %16 = arith.maximumf %14, %15 : vector<16x128xf32>
    %cst_14 = arith.constant dense<0.000000e+00> : vector<16x128xf32>
    %17 = tpu.matmul %5, %16, %cst_14 {dimension_numbers = #tpu.dot_dimension_numbers<[1], [0], [0], [1], [0, 0, 1, 1], [], []>} : vector<16x16xf32>, vector<16x128xf32>, vector<16x128xf32> -> vector<16x128xf32>
    %c1_15 = arith.constant 1 : index
    %c0_16 = arith.constant 0 : index
    %c0_17 = arith.constant 0 : index
    %18 = vector.load %arg3[%c1_15, %c0_16, %c0_17] : memref<3x128x128xf32, #tpu.memory_space<vmem>>, vector<1x128x128xf32>
    %19 = vector.shape_cast %18 : vector<1x128x128xf32> to vector<128x128xf32>
    %cst_18 = arith.constant dense<0.000000e+00> : vector<16x128xf32>
    %20 = tpu.matmul %17, %19, %cst_18 {dimension_numbers = #tpu.dot_dimension_numbers<[1], [0], [0], [1], [0, 0, 1, 1], [], []>} : vector<16x128xf32>, vector<128x128xf32>, vector<16x128xf32> -> vector<16x128xf32>
    %21 = vector.extract_strided_slice %6 {offsets = [1, 0], sizes = [1, 128], strides = [1, 1]} : vector<4x128xf32> to vector<1x128xf32>
    %22 = vector.broadcast %21 : vector<1x128xf32> to vector<16x128xf32>
    %23 = arith.addf %20, %22 : vector<16x128xf32>
    %cst_19 = arith.constant 0.000000e+00 : f32
    %24 = vector.broadcast %cst_19 : f32 to vector<16x128xf32>
    %25 = arith.maximumf %23, %24 : vector<16x128xf32>
    %c2 = arith.constant 2 : index
    %c0_20 = arith.constant 0 : index
    %c0_21 = arith.constant 0 : index
    %26 = vector.load %arg3[%c2, %c0_20, %c0_21] : memref<3x128x128xf32, #tpu.memory_space<vmem>>, vector<1x128x128xf32>
    %27 = vector.shape_cast %26 : vector<1x128x128xf32> to vector<128x128xf32>
    %cst_22 = arith.constant dense<0.000000e+00> : vector<16x128xf32>
    %28 = tpu.matmul %25, %27, %cst_22 {dimension_numbers = #tpu.dot_dimension_numbers<[1], [0], [0], [1], [0, 0, 1, 1], [], []>} : vector<16x128xf32>, vector<128x128xf32>, vector<16x128xf32> -> vector<16x128xf32>
    %c0_23 = arith.constant 0 : index
    %c0_24 = arith.constant 0 : index
    %29 = vector.load %arg2[%c0_23, %c0_24] : memref<2x16xf32, #tpu.memory_space<vmem>>, vector<2x16xf32>
    %cst_25 = arith.constant dense<0.000000e+00> : vector<2x128xf32>
    %30 = tpu.matmul %29, %28, %cst_25 {dimension_numbers = #tpu.dot_dimension_numbers<[1], [0], [0], [1], [0, 0, 1, 1], [], []>} : vector<2x16xf32>, vector<16x128xf32>, vector<2x128xf32> -> vector<2x128xf32>
    %31 = vector.extract_strided_slice %6 {offsets = [2, 0], sizes = [2, 128], strides = [1, 1]} : vector<4x128xf32> to vector<2x128xf32>
    %32 = arith.addf %30, %31 : vector<2x128xf32>
    %c0_26 = arith.constant 0 : index
    %c0_27 = arith.constant 0 : index
    %c0_28 = arith.constant 0 : index
    %33 = vector.load %arg6[%c0_26, %c0_27, %c0_28] : memref<1x2x128xf32, #tpu.memory_space<vmem>>, vector<1x2x128xf32>
    %34 = vector.shape_cast %33 : vector<1x2x128xf32> to vector<2x128xf32>
    %35 = vector.shape_cast %32 : vector<2x128xf32> to vector<1x2x128xf32>
    tpu.vector_store %arg6[%c0_26, %c0_27, %c0_28], %35 {strides = array<i32>} : memref<1x2x128xf32, #tpu.memory_space<vmem>>, vector<1x2x128xf32>,
    return
  }
  func.func @transform_0(%arg0: i32) -> (i32, i32, i32) {
    %c0_i32 = arith.constant 0 : i32
    %c0_i32_0 = arith.constant 0 : i32
    %c0_i32_1 = arith.constant 0 : i32
    %c0_i32_2 = arith.constant 0 : i32
    return %c0_i32, %c0_i32_0, %c0_i32_1 : i32, i32, i32
  }
  func.func @transform_1(%arg0: i32) -> (i32, i32) {
    %c0_i32 = arith.constant 0 : i32
    %c0_i32_0 = arith.constant 0 : i32
    %c0_i32_1 = arith.constant 0 : i32
    return %c0_i32, %c0_i32_0 : i32, i32
  }
  func.func @transform_2(%arg0: i32) -> (i32, i32, i32) {
    %c0_i32 = arith.constant 0 : i32
    %c0_i32_0 = arith.constant 0 : i32
    %c0_i32_1 = arith.constant 0 : i32
    %c0_i32_2 = arith.constant 0 : i32
    return %c0_i32, %c0_i32_0, %c0_i32_1 : i32, i32, i32
  }
  func.func @transform_3(%arg0: i32) -> (i32, i32) {
    %c0_i32 = arith.constant 0 : i32
    %c0_i32_0 = arith.constant 0 : i32
    %c0_i32_1 = arith.constant 0 : i32
    return %c0_i32, %c0_i32_0 : i32, i32
  }
  func.func @transform_4(%arg0: i32) -> (i32, i32, i32) {
    %c0_i32 = arith.constant 0 : i32
    %c0_i32_0 = arith.constant 0 : i32
    %c0_i32_1 = arith.constant 0 : i32
    return %arg0, %c0_i32, %c0_i32_0 : i32, i32, i32
  }
  func.func @transform_5(%arg0: i32) -> (i32, i32, i32) {
    %c0_i32 = arith.constant 0 : i32
    %c0_i32_0 = arith.constant 0 : i32
    %c0_i32_1 = arith.constant 0 : i32
    return %arg0, %c0_i32, %c0_i32_0 : i32, i32, i32
  }
}

</mosaic_0001>

<bundles_post_ra>
// kernel: tpu_custom_call.1
= control target key start
LH: loop header
LB: loop body
LE: loop exit
PB: predicated region body
PF: predicated region fallthrough
CT: control target
= control target key end

     0   :  { %10 = vsyncpa [#allocation3], 0  ;;  %s1451_s0 = inlined_call_operand.vmem [shape: f32[2,16,16], index: 0, kind: input, shape index: {}]   ;;  %s1452_s1 = inlined_call_operand.vmem [shape: f32[2,16], index: 1, kind: input, shape index: {}]   ;;  %s1453_s2 = inlined_call_operand.hbm [shape: f32[3,128,128], index: 2, kind: input, shape index: {}]   ;;  %s1454_s3 = inlined_call_operand.vmem [shape: f32[4,128], index: 3, kind: input, shape index: {}]   ;;  %s1455_s4 = inlined_call_operand.vmem [shape: f32[4,16,4], index: 4, kind: input, shape index: {}]   ;;  %s1456_s5 = inlined_call_operand.hbm [shape: f32[4,2,128], index: 5, kind: output, shape index: {}]  }
   0x1   :  { %11 = vsyncpa [#allocation4], 0 }
   0x2   :  { %13 = vsyncpa [#allocation4 + $0x1], 0  ;;  %s1288_s18 = smov 0   ;;  %s1290_s19 = smov 0  }
   0x3   :  { %s1292_s20 = smov 0   ;;  %s1294_s21 = smov 0  }
   0x4 LB: > { %s1309_s22 = sadd.s32 4294967295, %s1249_s21   ;;  %s855_s23 = sadd.s32 4294967294, %s1249_s21   ;;  %s1249_s21 = sphi %s1294_s21, %s1472_s21   ;;  %s1245_s20 = sphi %s1292_s20, %s1471_s20   ;;  %s1241_s19 = sphi %s1290_s19, %s1470_s19   ;;  %s1237_s18 = sphi %s1288_s18, %s1469_s18  }
   0x5   : > { %s1313_s24 = sadd.s32 1, %s1249_s21   ;;  %s136_s25 = sadd.s32 1, %s1245_s20 }
   0x6   : > { %s133_s26 = ssub.s32 %s1249_s21, %s1313_s24  ;;  %p146_p0 = scmp.ne.s32.totalorder %s1245_s20, %s1241_s19 }
   0x7   : > { %p134_p1 = scmp.eq.s32.totalorder %s133_s26, 0  ;;  %p147_p2 = scmp.eq.s32.totalorder %s1309_s22, 3 }
   0x8   : > { %p152_p3 = scmp.ne.s32.totalorder %s1241_s19, %s1237_s18  ;;  %p153_p4 = scmp.eq.s32.totalorder %s855_s23, 3 }
   0x9   : > { %s1324_s27 = scalar_select %p134_p1, %s1245_s20, %s136_s25  }
   0xa   : > { %p1326_p5 = por %p147_p2, %p146_p0  ;;  %p1330_p6 = por %p153_p4, %p152_p3 }
   0xb   : > { %p856_p7 = scmp.ge.s32.totalorder %s1249_s21, 1  ;;  %p160_p8 = scmp.lt.s32.totalorder %s1249_s21, 5 }
   0xc   : > { %s1460_s28 = scalar_select %p1326_p5, 1, 0 }
   0xd   : > { %s1461_s29 = scalar_select %p1330_p6, 1, 0 }
   0xe   : > { %p1457_p9 = scmp.eq.s32.totalorder %s1309_s22, 0  ;;  %p1337_p10 = pnand %p856_p7, %p160_p8 }
   0xf   : > { %s1251_s6 = smov [#allocation2]   ;;  %s1155_s11 = scalar_lea.hbm %s1453_s2, 6144 }
  0x10   : > { %s1462_s30 = scalar_select %p1337_p10, 1, 0 }
  0x11   : > { %s178_s7 = sshll.u32 %s1251_s6, 4  ;;  %p1106_p11 = pneg %p1337_p10  ;;  %s179_s7 = int_to_ptr.vmem [resolvable:$true] %s178_s7 }
  0x12   : > { %p1156_p13 = scmp.ne.s32.totalorder %s1453_s2, %s1155_s11  ;;  %p1162_p3 = scmp.lt.u32.totalorder %s1155_s11, %s1453_s2 }
  0x13   : > { %p1345_p12 = pnand %p1457_p9, %p1106_p11 }
  0x15   : > { %p1157_p0 = pneg %p1345_p12 }
  0x17   : > { %p1158_p1 = pnand %p1157_p0, %p1156_p13 }
  0x19   : > { %p1159_p2 = pneg %p1158_p1 }
  0x1b   : > { %p1164_p4 = pnand %p1162_p3, %p1159_p2 }
  0x1d   : > { %1167 = shalt.err (!%p1164_p4)
}
  0x1e   : > { %s1168_s16 = scalar_lea.vmem %s179_s7, 6144  ;;  %p1176_p9 = scmp.lt.s32.totalorder %s179_s7, %s179_s7 }
  0x1f   : > { %p1169_p7 = scmp.ne.s32.totalorder %s179_s7, %s1168_s16  ;;  %p1177_p6 = scmp.lt.s32.totalorder %s1168_s16, %s1168_s16 }
  0x21   : > { %p1171_p8 = pnand %p1169_p7, %p1157_p0  ;;  %p1178_p5 = por %p1177_p6, %p1176_p9 }
  0x23   : > { %p1172_p11 = pneg %p1171_p8 }
  0x25   : > { %p1179_p10 = pnand %p1178_p5, %p1172_p11 }
  0x27   : > { %1182 = shalt.err (!%p1179_p10)
}
  0x28   : > { %s1252_s17 = smov 128   ;;  %s1253_s23 = smov 8  }
  0x29   : > { %1109 = dma.hbm_to_vmem [thread:$0]  (!%p1345_p12), %s1453_s2, 6144, %s179_s7, [#allocation3], %s1252_s17, %s1252_s17, %s1253_s23  }
  0x2a   : > { %p1464_p13 = scmp.ne.s32.totalorder %s1462_s30, 0 }
  0x2b   : > { %p1465_p1 = scmp.eq.s32.totalorder (!%p1464_p13), %s1309_s22, 0 }
  0x2c   : > { %205 = sbr.rel (%p1464_p13) target bundleno = 1380 (0x564), region = 40 }
  0x33   : > { %1228 = dma.done.wait (%p1465_p1), [#allocation3], 6144   ;;  %p1466_p0 = pmov %p1465_p1 }
  0x34   : > { %p233_p5 = scmp.lt.s32.totalorder %s1309_s22, 3  ;;  %vm246_vm0 = vcmask 130048   ;;  %v240_v2 = vld [vmem:[%s1451_s0] sm:$0xff]  ;;  %v241_v4 = vld [vmem:[%s1451_s0 + $0x8] sm:$0xff]  ;;  %vm340_vm1 = vcmask 1043456   ;;  %vm333_vm2 = vcmask 31744   ;;  %v329_v33 = vlaneseq }
  0x35   : > { %1230 = vsyncadd (%p1466_p0), [#allocation3], 4294961152  ;;  %933 = vmatprep.mubr.msk.f32.mxu0 %vm246_vm0, %v240_v2  ;;  %v328_v5 = vld [vmem:[#allocation2] sm:$0xff]  ;;  %v864_v8 = vld [vmem:[%s1451_s0 + $0x10] sm:$0xff]  ;;  %vm1255_vm3 = vmmov 0   ;;  %s875_s8 = sshll.u32 %s1309_s22, 5 }
  0x36   : > { %s234_s6 = scalar_select %p233_p5, %s1309_s22, 3  ;;  %936 = vmatprep.subr.msk.mxu1 %vm340_vm1, %v328_v5  ;;  %v503_v9 = vld [vmem:[#allocation2 + $0x80] sm:$0xff]  ;;  %v504_v10 = vld [vmem:[#allocation2 + $0x88] sm:$0xff]  ;;  %v505_v11 = vld [vmem:[#allocation2 + $0x90] sm:$0xff]  ;;  %v330_v34 = vshrl.u32 %v329_v33, 7 }
  0x37   : > { %937 = vmatpush3.msk.msra.mxu1 %vm340_vm1, %v328_v5  ;;  %v1033_v12 = vpack.c.bf16 %v504_v10, %v503_v9  ;;  %v506_v13 = vld [vmem:[#allocation2 + $0x98] sm:$0xff]  ;;  %v507_v15 = vld [vmem:[#allocation2 + $0xa0] sm:$0xff]  ;;  %v508_v16 = vld [vmem:[#allocation2 + $0xa8] sm:$0xff]  ;;  %s1409_s13 = scalar_lea.hbm %s1456_s5, %s875_s8  ;;  %p1467_p9 = scmp.ne.s32.totalorder %s1460_s28, 0 }
  0x38   : > { %s878_s9 = sshll.u32 %s234_s6, 4  ;;  %v1037_v14 = vpack.c.bf16 %v506_v13, %v505_v11  ;;  %v1041_v17 = vpack.c.bf16 %v508_v16, %v507_v15  ;;  %v509_v18 = vld [vmem:[#allocation2 + $0xb0] sm:$0xff]  ;;  %v510_v19 = vld [vmem:[#allocation2 + $0xb8] sm:$0xff]  ;;  %v511_v21 = vld [vmem:[#allocation2 + $0xc0] sm:$0xff]  ;;  %v331_v35 = vsub.s32 0, %v330_v34  ;;  %v1254_v16 = vmov 0.0|0.0  }
  0x39   : > { %s237_s11 = scalar_lea.vmem %s1455_s4, %s878_s9  ;;  %v1045_v20 = vpack.c.bf16 %v510_v19, %v509_v18  ;;  %v512_v22 = vld [vmem:[#allocation2 + $0xc8] sm:$0xff]  ;;  %v513_v24 = vld [vmem:[#allocation2 + $0xd0] sm:$0xff]  ;;  %v514_v25 = vld [vmem:[#allocation2 + $0xd8] sm:$0xff]  ;;  %s230_s9 = sand.u32 1, %s1241_s19  }
  0x3a   : > { %v238_v0 = vld [vmem:[%s237_s11] sm:$0xff]  ;;  %v239_v1 = vld [vmem:[%s237_s11 + $0x8] sm:$0xff]  ;;  %v1049_v23 = vpack.c.bf16 %v512_v22, %v511_v21  ;;  %v1053_v26 = vpack.c.bf16 %v514_v25, %v513_v24  ;;  %v517_v30 = vld [vmem:[#allocation2 + $0xf0] sm:$0xff]  ;;  %s861_s10 = sshll.u32 %s230_s9, 1  ;;  %s771_s14 = scalar_lea.sflag [#allocation4], %s230_s9 }
  0x3b   : > { %v1025_v3 = vpack.c.bf16 %v239_v1, %v238_v0  ;;  %v515_v27 = vld [vmem:[#allocation2 + $0xe0] sm:$0xff]  ;;  %v516_v28 = vld [vmem:[#allocation2 + $0xe8] sm:$0xff]  ;;  %v518_v31 = vld [vmem:[#allocation2 + $0xf8] sm:$0xff]  ;;  %s232_s11 = scalar_lea.vmem [#allocation5], %s861_s10  ;;  %s1257_s22 = smov [#allocation5]  }
  0x3c   : > { %v1057_v29 = vpack.c.bf16 %v516_v28, %v515_v27  ;;  %v1061_v32 = vpack.c.bf16 %v518_v31, %v517_v30  ;;  %v1391_v36 = vld [vmem:[%s1454_s3] sm:$0xf]  ;;  %v865_v45 = vld [vmem:[%s1451_s0 + $0x18] sm:$0xff]  ;;  %v602_v47 = vld [vmem:[#allocation2 + $0x108] sm:$0xff]  ;;  %s784_s30 = sshll.u32 %s232_s11, 4  ;;  %s1187_s16 = sshll.u32 %s1257_s22, 4  ;;  %s1411_s30 = int_to_ptr.vmem [resolvable:$true] %s784_s30  ;;  %s1188_s16 = int_to_ptr.vmem [resolvable:$false] %s1187_s16 }
  0x3d   : > { %1026 = vmatprep.subr.bf16.mxu0 %v1025_v3  ;;  %v332_v37 = vrot.slane %v1391_v36, %v331_v35  ;;  %v601_v46 = vld [vmem:[#allocation2 + $0x100] sm:$0xff]  ;;  %v603_v48 = vld [vmem:[#allocation2 + $0x110] sm:$0xff]  ;;  %v604_v50 = vld [vmem:[#allocation2 + $0x118] sm:$0xff]  ;;  %v694_v22 = vrot.slane %v1391_v36, 2  ;;  %s1183_s15 = scalar_lea.vmem %s1411_s30, 32  ;;  %s1189_s17 = scalar_lea.vmem %s1188_s16, 64 }
  0x3e   : > { %1028 = vmatpush3.bf16.msra.mxu0 %v1025_v3  ;;  %v1065_v49 = vpack.c.bf16 %v602_v47, %v601_v46  ;;  %v1069_v51 = vpack.c.bf16 %v604_v50, %v603_v48  ;;  %v605_v52 = vld [vmem:[#allocation2 + $0x120] sm:$0xff]  ;;  %v606_v53 = vld [vmem:[#allocation2 + $0x128] sm:$0xff]  ;;  %v607_v55 = vld [vmem:[#allocation2 + $0x130] sm:$0xff]  ;;  %p1184_p6 = scmp.ne.s32.totalorder %s1411_s30, %s1183_s15  ;;  %p1190_p2 = scmp.lt.s32.totalorder %s1411_s30, %s1188_s16 }
  0x3f   : > { %1034 = vmatprep.subr.bf16.mxu0 %v1033_v12  ;;  %v1073_v54 = vpack.c.bf16 %v606_v53, %v605_v52  ;;  %v608_v56 = vld [vmem:[#allocation2 + $0x138] sm:$0xff]  ;;  %v609_v58 = vld [vmem:[#allocation2 + $0x140] sm:$0xff]  ;;  %v610_v59 = vld [vmem:[#allocation2 + $0x148] sm:$0xff]  ;;  %p1191_p3 = scmp.lt.s32.totalorder %s1189_s17, %s1183_s15 }
  0x40   : > { %v1077_v57 = vpack.c.bf16 %v608_v56, %v607_v55  ;;  %v1081_v60 = vpack.c.bf16 %v610_v59, %v609_v58  ;;  %v611_v61 = vld [vmem:[#allocation2 + $0x150] sm:$0xff]  ;;  %v612_v62 = vld [vmem:[#allocation2 + $0x158] sm:$0xff]  ;;  %v613_v0 = vld [vmem:[#allocation2 + $0x160] sm:$0xff]  ;;  %p1185_p10 = pnand %p1184_p6, %p1467_p9 }
  0x41   : > { %934 = vmatmul.mubr.msk.f32.vlgmr.msra.gmra.mrb[0].mxu0 %vm246_vm0, %v241_v4  ;;  %v1085_v63 = vpack.c.bf16 %v612_v62, %v611_v61  ;;  %v614_v1 = vld [vmem:[#allocation2 + $0x168] sm:$0xff]  ;;  %v615_v5 = vld [vmem:[#allocation2 + $0x170] sm:$0xff]  ;;  %v692_v21 = vld [vmem:[%s1452_s1] sm:$0x3]  ;;  %p1192_p4 = por %p1191_p3, %p1190_p2 }
  0x42   : > { %1036 = vmatpush3.bf16.msra.mxu0 %v1033_v12  ;;  %v1089_v2 = vpack.c.bf16 %v614_v1, %v613_v0  ;;  %p1186_p12 = pneg %p1185_p10 }
  0x43   : > { %1038 = vmatprep.subr.bf16.mxu0 %v1037_v14 }
  0x44   : > { %p1193_p7 = pnand %p1192_p4, %p1186_p12 }
  0x46   : > { %1040 = vmatpush3.bf16.msra.mxu0 %v1037_v14 }
  0x47   : > { %1042 = vmatprep.subr.bf16.mxu0 %v1041_v17 }
  0x4a   : > { %1044 = vmatpush3.bf16.msra.mxu0 %v1041_v17  ;;  %v1256_v17 = vmov 0.0  }
  0x4b   : > { %1046 = vmatprep.subr.bf16.mxu0 %v1045_v20 }
  0x4e   : > { %1048 = vmatpush3.bf16.msra.mxu0 %v1045_v20 }
  0x4f   : > { %1050 = vmatprep.subr.bf16.mxu0 %v1049_v23 }
  0x52   : > { %1052 = vmatpush3.bf16.msra.mxu0 %v1049_v23 }
  0x53   : > { %1054 = vmatprep.subr.bf16.mxu0 %v1053_v26 }
  0x56   : > { %1056 = vmatpush3.bf16.msra.mxu0 %v1053_v26 }
  0x57   : > { %1058 = vmatprep.subr.bf16.mxu0 %v1057_v29 }
  0x5a   : > { %1060 = vmatpush3.bf16.msra.mxu0 %v1057_v29 }
  0x5b   : > { %1062 = vmatprep.subr.bf16.mxu0 %v1061_v32 }
  0x5e   : > { %1064 = vmatpush3.bf16.msra.mxu0 %v1061_v32 }
  0x5f   : > { %1097 = vmatprep.subr.bf16.mxu0 %v1254_v16 }
 0x114   : > { %v935_v6 = vpop.f32.mrb[0].mxu0 }
 0x115   : > { %v319_v7 = vpop.f32.mrb[1].mxu0 }
 0x116   : > { %938 = vmatprep.mubr.msk.f32.mxu1 %vm333_vm2, %v319_v7 }
 0x117   : > { %939 = vmatmul.mubr.msk.f32.vlgmr.msra.gmra.mrb[0].mxu1 %vm333_vm2, %v935_v6  ;;  %v616_v6 = vld [vmem:[#allocation2 + $0x178] sm:$0xff] }
 0x118   : > { %945 = vmatprep.mubr.msk.f32.mxu1 %vm246_vm0, %v864_v8  ;;  %v1093_v7 = vpack.c.bf16 %v616_v6, %v615_v5  ;;  %v521_v8 = vsub.s32 1, %v330_v34 }
 0x11a   : > { %v522_v9 = vrot.slane %v1391_v36, %v521_v8 }
 0x1ea   : > { %v940_v38 = vpop.f32.mrb[0].mxu1 }
 0x1eb   : > { %v416_v39 = vadd.f32 %v940_v38, %v332_v37  ;;  %v410_v40 = vpop.f32.mrb[1].mxu1 }
 0x1ec   : > { %v411_v41 = vadd.f32 %v410_v40, %v332_v37 }
 0x1ed   : > { %v420_v42 = vmax.f32 %v416_v39, 0.0 }
 0x1ee   : > { %v419_v43 = vmax.f32 %v411_v41, 0.0 }
 0x1f0   : > { %v1029_v44 = vpack.c.bf16 %v420_v42, %v419_v43 }
 0x1f2   : > { %1030 = vmatprep.subr.bf16.mxu1 %v1029_v44 }
 0x1f3   : > { %1032 = vmatpush3.bf16.msra.mxu1 %v1029_v44 }
 0x1f4   : > { %1066 = vmatprep.subr.bf16.mxu1 %v1065_v49 }
 0x1f6   : > { %946 = vmatmul.mubr.msk.f32.vlgmr.msra.gmra.mrb[2].mxu1 %vm246_vm0, %v865_v45 }
 0x1f7   : > { %1068 = vmatpush3.bf16.msra.mxu1 %v1065_v49 }
 0x1f8   : > { %1070 = vmatprep.subr.bf16.mxu1 %v1069_v51 }
 0x1fb   : > { %1072 = vmatpush3.bf16.msra.mxu1 %v1069_v51 }
 0x1fc   : > { %1074 = vmatprep.subr.bf16.mxu1 %v1073_v54 }
 0x1ff   : > { %1076 = vmatpush3.bf16.msra.mxu1 %v1073_v54 }
 0x200   : > { %1078 = vmatprep.subr.bf16.mxu1 %v1077_v57 }
 0x203   : > { %1080 = vmatpush3.bf16.msra.mxu1 %v1077_v57 }
 0x204   : > { %1082 = vmatprep.subr.bf16.mxu1 %v1081_v60 }
 0x207   : > { %1084 = vmatpush3.bf16.msra.mxu1 %v1081_v60 }
 0x208   : > { %1086 = vmatprep.subr.bf16.mxu1 %v1085_v63 }
 0x20b   : > { %1088 = vmatpush3.bf16.msra.mxu1 %v1085_v63 }
 0x20c   : > { %1090 = vmatprep.subr.bf16.mxu1 %v1089_v2 }
 0x20f   : > { %1092 = vmatpush3.bf16.msra.mxu1 %v1089_v2 }
 0x210   : > { %1094 = vmatprep.subr.bf16.mxu1 %v1093_v7 }
 0x213   : > { %1096 = vmatpush3.bf16.msra.mxu1 %v1093_v7 }
 0x2c9   : > { %v947_v3 = vpop.f32.mrb[2].mxu1 }
 0x2ca   : > { %v493_v4 = vpop.f32.mrb[3].mxu1 }
 0x2cb   : > { %980 = vmatprep.mubr.f32.mxu0 %v493_v4 }
 0x2cc   : > { %981 = vmatmul.mubr.f32.vlgmr.msra.gmra.mrb[2].mxu0 %v947_v3 }
 0x2cd   : > { %1022 = vmatprep.mubr.msk.f32.mxu0 %vm1255_vm3, %v1256_v17 }
 0x39f   : > { %v982_v10 = vpop.f32.mrb[2].mxu0 }
 0x3a0   : > { %v595_v11 = vadd.f32 %v982_v10, %v522_v9  ;;  %v589_v12 = vpop.f32.mrb[3].mxu0 }
 0x3a1   : > { %v590_v13 = vadd.f32 %v589_v12, %v522_v9 }
 0x3a2   : > { %v599_v15 = vmax.f32 %v595_v11, 0.0 }
 0x3a3   : > { %v598_v14 = vmax.f32 %v590_v13, 0.0 }
 0x3a5   : > { %1015 = vmatprep.mubr.f32.mxu1 %v598_v14 }
 0x3a6   : > { %1016 = vmatmul.mubr.f32.vlgmr.msra.gmra.mrb[4].mxu1 %v599_v15 }
 0x479   : > { %v1017_v18 = vpop.f32.mrb[4].mxu1 }
 0x47a   : > { %v683_v19 = vpop.f32.mrb[5].mxu1 }
 0x47b   : > { %v1098_v20 = vpack.c.bf16 %v1017_v18, %v683_v19 }
 0x47d   : > { %1099 = vmatpush3.bf16.msra.mxu0 %v1098_v20 }
 0x480   : > { %1023 = vmatmul.mubr.msk.f32.vlgmr.msra.gmra.mrb[4].mxu0 %vm246_vm0, %v692_v21 }
 0x553   : > { %v765_v23 = vpop.f32.mrb[4].mxu0 }
 0x554   : > { %v766_v24 = vadd.f32 %v765_v23, %v694_v22  ;;  %v1024_v25 = vpop.f32.mrb[5].mxu0 }
 0x556   : > { %769 = vst [vmem:[%s232_s11] sm:$0x3] %v766_v24 }
 0x557   : > { %1196 = shalt.err (!%p1193_p7)
}
 0x558   : > { %s1197_s23 = scalar_lea.hbm %s1409_s13, 32  ;;  %s1201_s6 = scalar_lea.hbm %s1456_s5, 128 }
 0x559   : > { %p1198_p8 = scmp.ne.s32.totalorder %s1409_s13, %s1197_s23  ;;  %p1202_p1 = scmp.lt.u32.totalorder %s1409_s13, %s1456_s5 }
 0x55a   : > { %p1203_p0 = scmp.lt.u32.totalorder %s1201_s6, %s1197_s23  ;;  %p1205_p6 = scmp.lt.u32.totalorder %s1197_s23, %s1409_s13 }
 0x55b   : > { %p1199_p11 = pnand %p1198_p8, %p1467_p9 }
 0x55c   : > { %p1204_p5 = por %p1203_p0, %p1202_p1 }
 0x55d   : > { %p1200_p13 = pneg %p1199_p11 }
 0x55e   : > { %p1206_p10 = por %p1205_p6, %p1204_p5 }
 0x560   : > { %p1207_p12 = pnand %p1206_p10, %p1200_p13 }
 0x562   : > { %1210 = shalt.err (!%p1207_p12)
}
 0x563   : > { %1104 = dma.vmem_to_hbm [thread:$0]  (%p1467_p9), %s1411_s30, 32, %s1409_s13, %s771_s14  }
 0x564 PF: > { %p1116_p2 = scmp.ge.s32.totalorder %s1249_s21, 2  ;;  %s796_s8 = sand.u32 1, %s1237_s18  }
 0x565   : > { %p1468_p3 = scmp.ne.s32.totalorder %s1461_s29, 0  ;;  %s797_s11 = scalar_lea.sflag [#allocation4], %s796_s8 }
 0x567   : > { %p1111_p4 = pnand %p1116_p2, %p1468_p3 }
 0x569   : > { %1232 = dma.done.wait (!%p1111_p4), %s797_s11, 32  }
 0x56a   : > { %1234 = vsyncadd (!%p1111_p4), %s797_s11, 4294967264  ;;  %p16_p7 = scmp.ge.s32.totalorder %s1313_s24, 6   ;;  %s1469_s18 = smov %s1241_s19 }
 0x56b   : > { %s1470_s19 = smov %s1245_s20  ;;  %s1471_s20 = smov %s1324_s27 }
 0x56c   : > { %s1472_s21 = smov %s1313_s24  ;;  %18 = sbr.rel (!%p16_p7) target bundleno = 4 (0x4), region = 83 }
 0x573   :  { %802 = vsyncpa [#allocation3], 1 }
 0x574   :  { %804 = vsyncpa [#allocation3 + $0x1], 1 }
 0x575   :  { %805 = vsyncpa [#allocation4], 1 }
 0x576   :  { %807 = vsyncpa [#allocation4 + $0x1], 1 }

</bundles_post_ra>
